<compile_context>
chip_gen: v5e
topology: v5e:2x2
jax: 0.10.0
libtpu: 0.0.40
codegen_flags: <defaults>
</compile_context>

<pallas_src>
import functools

import jax
import jax.numpy as jnp
from jax.experimental import pallas as pl
from jax.experimental.pallas import tpu as pltpu


def _round_up(x, m):
    return (x + m - 1) // m * m


# ----------------------------------------------------------------------------
# Pallas kernels
# ----------------------------------------------------------------------------
def _fused_linear_kernel(x_ref, w_ref, b_ref, o_ref):
    """o = x @ W + b -- one MXU pass, unmasked lane-dense store.

    W = [W_cls | W_bbox4 | zero-pad] so both heads ride in a single matmul.
    """
    y = jnp.dot(x_ref[...], w_ref[...], preferred_element_type=jnp.float32)
    o_ref[...] = (y + b_ref[...]).astype(o_ref.dtype)


def _split_linear_kernel(xc_ref, xr_ref, wc_ref, wb_ref, bc_ref, bb_ref, o_ref):
    """General case xc != xr: two narrow matmuls into disjoint 128-aligned
    column ranges of the same output tile (no half-zero full-width weights)."""
    c_pad = wc_ref.shape[1]                       # static, multiple of 128
    yc = jnp.dot(xc_ref[...], wc_ref[...], preferred_element_type=jnp.float32)
    o_ref[:, :c_pad] = (yc + bc_ref[...]).astype(o_ref.dtype)
    yb = jnp.dot(xr_ref[...], wb_ref[...], preferred_element_type=jnp.float32)
    o_ref[:, c_pad:] = (yb + bb_ref[...]).astype(o_ref.dtype)


# ----------------------------------------------------------------------------
# Gridded pallas_call wrappers (traced inside the jitted forward functions)
# ----------------------------------------------------------------------------
def _pick_tile(n_rows):
    """Row tile: multiple of 16 (bf16-safe sublanes).

    - small batches: single tile
    - mid-size batches: split into >= 2 grid steps so v7x's two TensorCores
      both get work (dimension_semantics=("parallel",))
    - large batches: 1024-row tiles to amortize the ~0.35us per-step overhead
      (working set ~11 MiB f32, still under v5e's 16 MiB default scoped VMEM)
    """
    n = max(n_rows, 1)
    if n <= 256:
        return _round_up(n, 16)
    if n >= 4096:
        return 1024
    return min(512, _round_up(pl.cdiv(n, 2), 16))


def _gridded_linear(x, w, b):
    """y = x @ w + b, tiled over rows; ragged last block handled by Pallas."""
    n, rep = x.shape
    out_w = w.shape[1]                            # multiple of 128
    if n == 0:                                    # empty ROI batch guard
        return jnp.zeros((0, out_w), x.dtype)
    tm = _pick_tile(n)
    steps = pl.cdiv(n, tm)
    itemsize = jnp.dtype(x.dtype).itemsize
    cost = pl.CostEstimate(
        flops=2 * n * rep * out_w,
        transcendentals=0,
        bytes_accessed=(n * rep + rep * out_w + out_w + n * out_w) * itemsize,
    )
    return pl.pallas_call(
        _fused_linear_kernel,
        out_shape=jax.ShapeDtypeStruct((n, out_w), x.dtype),
        grid_spec=pltpu.PrefetchScalarGridSpec(
            num_scalar_prefetch=0,
            grid=(steps,),
            in_specs=[
                pl.BlockSpec((tm, rep), lambda i: (i, 0)),     # x tile
                pl.BlockSpec((rep, out_w), lambda i: (0, 0)),  # W (resident)
                pl.BlockSpec((1, out_w), lambda i: (0, 0)),    # bias (resident)
            ],
            out_specs=pl.BlockSpec((tm, out_w), lambda i: (i, 0)),
        ),
        compiler_params=pltpu.CompilerParams(
            dimension_semantics=("parallel",)),
        cost_estimate=cost,
    )(x, w, b)


def _gridded_split(xc, xr, w_cls, w_bbox, b_cls, b_bbox):
    """Combined [cls | bbox4] output from distinct cls / bbox activations."""
    n, rep = xc.shape
    c_pad = w_cls.shape[1]
    r_pad = w_bbox.shape[1]
    out_w = c_pad + r_pad
    if n == 0:                                    # empty ROI batch guard
        return jnp.zeros((0, out_w), xc.dtype)
    tm = _pick_tile(n)
    steps = pl.cdiv(n, tm)
    itemsize = jnp.dtype(xc.dtype).itemsize
    cost = pl.CostEstimate(
        flops=2 * n * rep * out_w,
        transcendentals=0,
        bytes_accessed=(2 * n * rep + rep * out_w + out_w + n * out_w)
        * itemsize,
    )
    return pl.pallas_call(
        _split_linear_kernel,
        out_shape=jax.ShapeDtypeStruct((n, out_w), xc.dtype),
        grid_spec=pltpu.PrefetchScalarGridSpec(
            num_scalar_prefetch=0,
            grid=(steps,),
            in_specs=[
                pl.BlockSpec((tm, rep), lambda i: (i, 0)),      # xc tile
                pl.BlockSpec((tm, rep), lambda i: (i, 0)),      # xr tile
                pl.BlockSpec((rep, c_pad), lambda i: (0, 0)),   # W_cls (resident)
                pl.BlockSpec((rep, r_pad), lambda i: (0, 0)),   # W_bbox4 (resident)
                pl.BlockSpec((1, c_pad), lambda i: (0, 0)),     # b_cls
                pl.BlockSpec((1, r_pad), lambda i: (0, 0)),     # b_bbox4
            ],
            out_specs=pl.BlockSpec((tm, out_w), lambda i: (i, 0)),
        ),
        compiler_params=pltpu.CompilerParams(
            dimension_semantics=("parallel",)),
        cost_estimate=cost,
    )(xc, xr, w_cls, w_bbox, b_cls, b_bbox)


# ----------------------------------------------------------------------------
# Jitted forward paths (slicing / tile epilogues fused with the kernel call)
# ----------------------------------------------------------------------------
@functools.partial(jax.jit, static_argnames=("num_classes", "num_reg"))
def _forward_shared_jit(x, w_fused, b_fused, *, num_classes, num_reg):
    out = _gridded_linear(x, w_fused, b_fused)
    scores = out[:, :num_classes]
    # torch: bbox_pred(x).repeat(1, num_bbox_reg_classes)  -> cheap VPU/XLA tile
    bbox_deltas = jnp.tile(out[:, num_classes:num_classes + 4], (1, num_reg))
    return scores, bbox_deltas


@functools.partial(jax.jit,
                   static_argnames=("num_classes", "num_reg", "c_pad"))
def _forward_split_jit(xc, xr, w_cls, b_cls, w_bbox, b_bbox, *,
                       num_classes, num_reg, c_pad):
    out = _gridded_split(xc, xr, w_cls, w_bbox, b_cls, b_bbox)
    scores = out[:, :num_classes]
    bbox_deltas = jnp.tile(out[:, c_pad:c_pad + 4], (1, num_reg))
    return scores, bbox_deltas


@functools.partial(jax.jit, static_argnames=("num_classes",))
def _forward_cls_list_jit(feats, w_cls, b_cls, *, num_classes):
    sizes = [f.shape[0] for f in feats]
    x_all = jnp.concatenate(feats, axis=0)
    s_all = _gridded_linear(x_all, w_cls, b_cls)[:, :num_classes]
    outs, off = [], 0
    for s in sizes:
        outs.append(s_all[off:off + s])
        off += s
    return outs


# ----------------------------------------------------------------------------
# Parameters (matches FPNPredictor.__init__ semantics) + derived fused weights
# ----------------------------------------------------------------------------
def _prepare_derived(p):
    rep, num_classes = p["w_cls_t"].shape
    dtype = p["w_cls_t"].dtype
    c_pad = _round_up(num_classes, 128)
    f_pad = _round_up(num_classes + 4, 128)

    # Fused (shared-x) weights: [W_cls | W_bbox4 | zeros] -> one MXU pass.
    w_fused = jnp.concatenate(
        [p["w_cls_t"], p["w_bbox_t"],
         jnp.zeros((rep, f_pad - num_classes - 4), dtype)], axis=1)
    b_fused = jnp.concatenate(
        [p["b_cls"], p["b_bbox"],
         jnp.zeros((f_pad - num_classes - 4,), jnp.float32)])[None, :]

    # Split (xc != xr) weights: each head padded to its own 128-lane block.
    w_cls_pad = jnp.concatenate(
        [p["w_cls_t"], jnp.zeros((rep, c_pad - num_classes), dtype)], axis=1)
    b_cls_pad = jnp.concatenate(
        [p["b_cls"], jnp.zeros((c_pad - num_classes,), jnp.float32)])[None, :]
    w_bbox_pad = jnp.concatenate(
        [p["w_bbox_t"], jnp.zeros((rep, 128 - 4), dtype)], axis=1)
    b_bbox_pad = jnp.concatenate(
        [p["b_bbox"], jnp.zeros((128 - 4,), jnp.float32)])[None, :]

    return {
        "w_fused": w_fused, "b_fused": b_fused,
        "w_cls_pad": w_cls_pad, "b_cls_pad": b_cls_pad,
        "w_bbox_pad": w_bbox_pad, "b_bbox_pad": b_bbox_pad,
        "c_pad": c_pad, "f_pad": f_pad,
    }


def init_params(key, representation_size, num_classes,
                cls_agnostic_bbox_reg=False, dtype=jnp.float32):
    k1, k2 = jax.random.split(key)
    # nn.Linear weight shape is (out, in); store transposed (in, out).
    w_cls = (0.01 * jax.random.normal(
        k1, (num_classes, representation_size), jnp.float32)).astype(dtype)
    w_bbox = (0.001 * jax.random.normal(
        k2, (4, representation_size), jnp.float32)).astype(dtype)
    params = {
        "w_cls_t": w_cls.T,                            # (rep, num_classes)
        "b_cls": jnp.zeros((num_classes,), jnp.float32),
        "w_bbox_t": w_bbox.T,                          # (rep, 4)
        "b_bbox": jnp.zeros((4,), jnp.float32),
        "num_classes": num_classes,
        "num_bbox_reg_classes": 2 if cls_agnostic_bbox_reg else num_classes,
    }
    params.update(_prepare_derived(params))
    return params


def cast_params_bf16(params):
    """Pre-cast weight streams to bf16 once (v6e/v7x: halves x/W HBM traffic).
    Biases stay f32 and are added to the f32 accumulator in-kernel."""
    out = dict(params)
    for k in ("w_cls_t", "w_bbox_t", "w_fused", "w_cls_pad", "w_bbox_pad"):
        out[k] = params[k].astype(jnp.bfloat16)
    return out


# ----------------------------------------------------------------------------
# Forward (mirrors FPNPredictor.forward)
# ----------------------------------------------------------------------------
def fpn_predictor_forward(params, xc, xr=None):
    """xr is not None  -> (scores, bbox_deltas) ; xr is None -> list of scores.

    Note: the `xr is xc` fast path is an object-identity check done here at
    the Python level (this dispatcher is NOT jitted); under an outer jit use
    the explicit _forward_shared_jit / _forward_split_jit entry points.
    """
    num_classes = params["num_classes"]
    num_reg = params["num_bbox_reg_classes"]
    if xr is not None:
        if xc.shape[0] == 0:                       # empty ROI batch guard
            return (jnp.zeros((0, num_classes), xc.dtype),
                    jnp.zeros((0, 4 * num_reg), xc.dtype))
        if xr is xc:
            # Common case: the same activation feeds both heads.
            return _forward_shared_jit(
                xc, params["w_fused"], params["b_fused"],
                num_classes=num_classes, num_reg=num_reg)
        return _forward_split_jit(
            xc, xr, params["w_cls_pad"], params["b_cls_pad"],
            params["w_bbox_pad"], params["b_bbox_pad"],
            num_classes=num_classes, num_reg=num_reg, c_pad=params["c_pad"])
    # xr is None: xc is a list of per-level features -> per-level cls scores.
    feats = list(xc)
    if not feats:
        return []
    if sum(f.shape[0] for f in feats) == 0:
        return [jnp.zeros((0, num_classes), f.dtype) for f in feats]
    return _forward_cls_list_jit(
        feats, params["w_cls_pad"], params["b_cls_pad"],
        num_classes=num_classes)


# ----------------------------------------------------------------------------
# Demo / smoke test
# ----------------------------------------------------------------------------
if __name__ == "__main__":
    key = jax.random.PRNGKey(0)
    N = 40                      # number of ROIs (small demo size)
    representation_size = 32    # in_channels
    num_classes = 8             # cfg.MODEL.ROI_BOX_HEAD.NUM_CLASSES
    cls_agnostic = False        # cfg.MODEL.CLS_AGNOSTIC_BBOX_REG

    kp, kx, kxr = jax.random.split(key, 3)
    params = init_params(kp, representation_size, num_classes, cls_agnostic)
    R = params["num_bbox_reg_classes"]

    x = jax.random.normal(kx, (N, representation_size), jnp.float32)
    xr_other = jax.random.normal(kxr, (N, representation_size), jnp.float32)

    hi = jax.lax.Precision.HIGHEST
    ref_scores = jnp.dot(x, params["w_cls_t"], precision=hi) + params["b_cls"]
    ref_bbox = jnp.tile(
        jnp.dot(x, params["w_bbox_t"], precision=hi) + params["b_bbox"], (1, R))

    # ---- Branch 1a: xr is xc (common case; single fused-matmul kernel) -----
    scores, bbox_deltas = fpn_predictor_forward(params, x, x)
    scores = jax.block_until_ready(scores)
    bbox_deltas = jax.block_until_ready(bbox_deltas)
    assert scores.shape == (N, num_classes)
    assert bbox_deltas.shape == (N, 4 * R)
    assert jnp.allclose(scores, ref_scores, atol=1e-4)
    assert jnp.allclose(bbox_deltas, ref_bbox, atol=1e-4)

    # ---- Branch 1b: distinct xc / xr (two narrow matmuls, disjoint cols) ---
    scores2, bbox2 = fpn_predictor_forward(params, x, xr_other)
    scores2 = jax.block_until_ready(scores2)
    bbox2 = jax.block_until_ready(bbox2)
    ref_bbox2 = jnp.tile(
        jnp.dot(xr_other, params["w_bbox_t"], precision=hi) + params["b_bbox"],
        (1, R))
    assert jnp.allclose(scores2, ref_scores, atol=1e-4)
    assert jnp.allclose(bbox2, ref_bbox2, atol=1e-4)

    # ---- Branch 2: xr is None -> list of per-level cls scores --------------
    feats = [x[:24], xr_other]
    cls_list = fpn_predictor_forward(params, feats, None)
    cls_list = [jax.block_until_ready(c) for c in cls_list]
    for feat, out in zip(feats, cls_list):
        ref = jnp.dot(feat, params["w_cls_t"], precision=hi) + params["b_cls"]
        assert out.shape == (feat.shape[0], num_classes)
        assert jnp.allclose(out, ref, atol=1e-4)

    # ---- bf16 streams (v6e/v7x): pre-cast weights once, biases stay f32 ----
    params_bf16 = cast_params_bf16(params)
    x_bf16 = x.astype(jnp.bfloat16)
    scores_bf16, bbox_bf16 = fpn_predictor_forward(params_bf16, x_bf16, x_bf16)
    scores_bf16 = jax.block_until_ready(scores_bf16)
    bbox_bf16 = jax.block_until_ready(bbox_bf16)
    assert jnp.allclose(scores_bf16.astype(jnp.float32), ref_scores, atol=5e-3)
    assert jnp.allclose(bbox_bf16.astype(jnp.float32), ref_bbox, atol=5e-3)

    # ---- Empty ROI batch guard ---------------------------------------------
    s0, b0 = fpn_predictor_forward(params, x[:0], x[:0])
    assert s0.shape == (0, num_classes) and b0.shape == (0, 4 * R)

    print("KERNEL_OK")
</pallas_src>

<mosaic_0001>
module attributes {stable_mosaic.version = 11 : i64} {
  func.func @_fused_linear_kernel(%arg0: i32, %arg1: memref<48x32xf32, #tpu.memory_space<vmem>>, %arg2: memref<32x128xf32, #tpu.memory_space<vmem>>, %arg3: memref<1x128xf32, #tpu.memory_space<vmem>>, %arg4: memref<48x128xf32, #tpu.memory_space<vmem>>) attributes {dimension_semantics = [#tpu.dimension_semantics<parallel>], iteration_bounds = array<i64: 1>, scalar_prefetch = 0 : i64, scratch_operands = 0 : i64, tpu.core_type = #tpu.core_type<tc>, window_params = [{transform_indices = @transform_0, window_bounds = array<i64: 48, 32>}, {pipeline_mode = #tpu.pipeline_mode<synchronous>, transform_indices = @transform_1, window_bounds = array<i64: 32, 128>}, {pipeline_mode = #tpu.pipeline_mode<synchronous>, transform_indices = @transform_2, window_bounds = array<i64: 1, 128>}, {transform_indices = @transform_3, window_bounds = array<i64: 48, 128>}]} {
    %c0 = arith.constant 0 : index
    %c0_0 = arith.constant 0 : index
    %0 = vector.load %arg1[%c0, %c0_0] : memref<48x32xf32, #tpu.memory_space<vmem>>, vector<48x32xf32>
    %c0_1 = arith.constant 0 : index
    %c0_2 = arith.constant 0 : index
    %1 = vector.load %arg2[%c0_1, %c0_2] : memref<32x128xf32, #tpu.memory_space<vmem>>, vector<32x128xf32>
    %cst = arith.constant dense<0.000000e+00> : vector<48x128xf32>
    %2 = tpu.matmul %0, %1, %cst {dimension_numbers = #tpu.dot_dimension_numbers<[1], [0], [0], [1], [0, 0, 1, 1], [], []>} : vector<48x32xf32>, vector<32x128xf32>, vector<48x128xf32> -> vector<48x128xf32>
    %c0_3 = arith.constant 0 : index
    %c0_4 = arith.constant 0 : index
    %3 = vector.load %arg3[%c0_3, %c0_4] : memref<1x128xf32, #tpu.memory_space<vmem>>, vector<1x128xf32>
    %4 = vector.broadcast %3 : vector<1x128xf32> to vector<48x128xf32>
    %5 = arith.addf %2, %4 : vector<48x128xf32>
    %c0_5 = arith.constant 0 : index
    %c0_6 = arith.constant 0 : index
    %6 = vector.load %arg4[%c0_5, %c0_6] : memref<48x128xf32, #tpu.memory_space<vmem>>, vector<48x128xf32>
    tpu.vector_store %arg4[%c0_5, %c0_6], %5 {strides = array<i32>} : memref<48x128xf32, #tpu.memory_space<vmem>>, vector<48x128xf32>,
    return
  }
  func.func @transform_0(%arg0: i32) -> (i32, i32) {
    %c0_i32 = arith.constant 0 : i32
    %c0_i32_0 = arith.constant 0 : i32
    return %arg0, %c0_i32 : i32, i32
  }
  func.func @transform_1(%arg0: i32) -> (i32, i32) {
    %c0_i32 = arith.constant 0 : i32
    %c0_i32_0 = arith.constant 0 : i32
    %c0_i32_1 = arith.constant 0 : i32
    return %c0_i32, %c0_i32_0 : i32, i32
  }
  func.func @transform_2(%arg0: i32) -> (i32, i32) {
    %c0_i32 = arith.constant 0 : i32
    %c0_i32_0 = arith.constant 0 : i32
    %c0_i32_1 = arith.constant 0 : i32
    return %c0_i32, %c0_i32_0 : i32, i32
  }
  func.func @transform_3(%arg0: i32) -> (i32, i32) {
    %c0_i32 = arith.constant 0 : i32
    %c0_i32_0 = arith.constant 0 : i32
    return %arg0, %c0_i32 : i32, i32
  }
}

</mosaic_0001>

<bundles_post_ra>
// kernel: _forward_shared_jit.1
= control target key start
LH: loop header
LB: loop body
LE: loop exit
PB: predicated region body
PF: predicated region fallthrough
CT: control target
= control target key end

     0   :  { %vm28_vm0 = vcmask 261120   ;;  %s238_s0 = inlined_call_operand.vmem [shape: f32[40,32], index: 0, kind: input, shape index: {}]   ;;  %s239_s1 = inlined_call_operand.vmem [shape: f32[32,128], index: 1, kind: input, shape index: {}]   ;;  %s240_s2 = inlined_call_operand.vmem [shape: f32[1,128], index: 2, kind: input, shape index: {}]   ;;  %s241_s3 = inlined_call_operand.vmem [shape: f32[40,128], index: 3, kind: output, shape index: {}]  }
   0x1   :  { %v23_v0 = vld [vmem:[%s239_s1 + $0x18] sm:$0xff]  ;;  %v22_v1 = vld [vmem:[%s239_s1 + $0x10] sm:$0xff]  ;;  %v21_v2 = vld [vmem:[%s239_s1 + $0x8] sm:$0xff] }
   0x2   :  { %153 = vmatpush.msra.mxu3 %v23_v0  ;;  %151 = vmatpush.msra.mxu1 %v23_v0  ;;  %v20_v3 = vld [vmem:[%s239_s1] sm:$0xff]  ;;  %v15_v5 = vld [vmem:[%s238_s0 + $0x8] sm:$0xff]  ;;  %v17_v6 = vld [vmem:[%s238_s0 + $0x18] sm:$0xff] }
   0x3   :  { %152 = vmatpush.msra.mxu2 %v23_v0  ;;  %59 = vmatpush.msra.mxu0 %v23_v0  ;;  %v18_v4 = vld [vmem:[%s238_s0 + $0x20] sm:$0xff]  ;;  %v19_v8 = vld [vmem:[%s238_s0 + $0x28] sm:$0xff]  ;;  %v16_v9 = vld [vmem:[%s238_s0 + $0x10] sm:$0xff] }
   0x4   :  { %156 = vmatpush.msra.mxu3 %v22_v1  ;;  %154 = vmatpush.msra.mxu1 %v22_v1  ;;  %v14_v7 = vld [vmem:[%s238_s0] sm:$0xff] }
   0x5   :  { %155 = vmatpush.msra.mxu2 %v22_v1  ;;  %60 = vmatpush.msra.mxu0 %v22_v1  ;;  %v163_v10 = vld [vmem:[%s240_s2] ss:$0 sm:$0xff] }
   0x6   :  { %159 = vmatpush.msra.mxu3 %v21_v2  ;;  %157 = vmatpush.msra.mxu1 %v21_v2 }
   0x7   :  { %158 = vmatpush.msra.mxu2 %v21_v2  ;;  %61 = vmatpush.msra.mxu0 %v21_v2 }
   0x8   :  { %162 = vmatpush.msra.mxu3 %v20_v3  ;;  %160 = vmatpush.msra.mxu1 %v20_v3 }
   0x9   :  { %149 = vmatmul.msk.f32.vlgmr.msra.gmra.mxu3 %vm28_vm0, %v18_v4  ;;  %146 = vmatmul.msk.f32.vlgmr.msra.gmra.mxu1 %vm28_vm0, %v15_v5 }
   0xa   :  { %161 = vmatpush.msra.mxu2 %v20_v3  ;;  %62 = vmatpush.msra.mxu0 %v20_v3 }
   0xb   :  { %148 = vmatmul.msk.f32.vlgmr.msra.gmra.mxu2 %vm28_vm0, %v17_v6  ;;  %145 = vmatmul.msk.f32.vlgmr.msra.gmra.mxu0 %vm28_vm0, %v14_v7 }
  0x11   :  { %150 = vmatmul.msk.f32.gmra.mxu3 %vm28_vm0, %v19_v8  ;;  %147 = vmatmul.msk.f32.gmra.mxu1 %vm28_vm0, %v16_v9 }
  0x86   :  { %v67_v11 = vpop.f32.mrf.mxu1 }
  0x87   :  { %v68_v12 = vadd.f32 %v163_v10, %v67_v11 }
  0x88   :  { %v64_v13 = vpop.f32.mrf.mxu0 }
  0x89   :  { %129 = vst [vmem:[%s241_s3 + $0x8] sm:$0xff] %v68_v12  ;;  %v65_v14 = vadd.f32 %v163_v10, %v64_v13 }
  0x8b   :  { %127 = vst [vmem:[%s241_s3] sm:$0xff] %v65_v14 }
  0x8c   :  { %v76_v15 = vpop.f32.mrf.mxu3 }
  0x8d   :  { %v77_v16 = vadd.f32 %v163_v10, %v76_v15 }
  0x8e   :  { %v70_v17 = vpop.f32.mrf.mxu1  ;;  %v73_v18 = vpop.f32.mrf.mxu2 }
  0x8f   :  { %135 = vst [vmem:[%s241_s3 + $0x20] sm:$0xff] %v77_v16  ;;  %v71_v19 = vadd.f32 %v163_v10, %v70_v17  ;;  %v74_v20 = vadd.f32 %v163_v10, %v73_v18 }
  0x91   :  { %131 = vst [vmem:[%s241_s3 + $0x10] sm:$0xff] %v71_v19 }
  0x92   :  { %133 = vst [vmem:[%s241_s3 + $0x18] sm:$0xff] %v74_v20 }
  0x94   :  { %v79_v21 = vpop.f32.mrf.mxu3 }

</bundles_post_ra>
